<compile_context>
chip_gen: v7x
topology: tpu7x:2x2x1
jax: 0.10.0
libtpu: 0.0.40
codegen_flags: <defaults>
</compile_context>

<pallas_src>
import numpy as np

import jax
import jax.numpy as jnp
from jax.experimental import pallas as pl
from jax.experimental.pallas import tpu as pltpu


def _build_weight_t(L, kernel_sizes):
    """Return W^T where moving_mean[t] = sum_s W[t, s] * x[s].

    W = (1/n) * sum_k A_k, with A_k the stride-1, edge-replicated AvgPool1d(kernel=k)
    operator (clipped taps accumulate into the first / last columns).
    """
    n = len(kernel_sizes)
    W = np.zeros((L, L), dtype=np.float32)
    rows = np.arange(L)
    for k in kernel_sizes:
        p = (k - 1) // 2
        w = 1.0 / (float(k) * float(n))
        for d in range(-p, p + 1):
            cols = np.clip(rows + d, 0, L - 1)
            np.add.at(W, (rows, cols), w)
    return W.T  # (L, L); contraction over axis 0 in the kernel


def _pick_c_tile(C):
    for ct in (512, 256, 128):
        if C % ct == 0:
            return ct
    return C  # small / irregular C: one full-C block (equal-to-full-dim is always legal)


def _decomp_kernel(wt_ref, x_ref, sea_ref, mean_ref):
    """One (batch, channel-tile) block: x_ref (1, Ct, L) -> sea/mean (1, Ct, L)."""
    x = x_ref[0].astype(jnp.float32)                        # (Ct, L)
    # moving_mean^T = x^T @ W^T on the MXU (full f32 precision).
    mean = jnp.dot(
        x, wt_ref[...],
        precision=jax.lax.Precision.HIGHEST,
        preferred_element_type=jnp.float32,
    )                                                       # (Ct, L)
    mean_ref[0] = mean.astype(mean_ref.dtype)
    sea_ref[0] = (x - mean).astype(sea_ref.dtype)           # sea = x - moving_mean


def series_decomp_multi(x, kernel_sizes):
    """x: (B, L, C). Returns (sea, moving_mean), each (B, L, C)."""
    kernel_sizes = tuple(int(k) for k in kernel_sizes)
    assert all(k % 2 == 1 for k in kernel_sizes), (
        "kernel sizes must be odd to preserve AvgPool1d same-length semantics")
    B, L, C = x.shape

    wt = jnp.asarray(_build_weight_t(L, kernel_sizes))      # (L, L) static operator
    xt = jnp.transpose(x, (0, 2, 1))                        # (B, C, L): lane-dense in L

    ct = _pick_c_tile(C)
    grid = (B, C // ct)
    io_spec = pl.BlockSpec((1, ct, L), lambda b, c: (b, c, 0))
    w_spec = pl.BlockSpec((L, L), lambda b, c: (0, 0))      # broadcast over the grid

    itemsize = jnp.dtype(x.dtype).itemsize
    cost = pl.CostEstimate(
        flops=2 * B * C * L * L + B * C * L,
        transcendentals=0,
        bytes_accessed=3 * B * L * C * itemsize + L * L * 4,
    )

    sea_t, mean_t = pl.pallas_call(
        _decomp_kernel,
        out_shape=(
            jax.ShapeDtypeStruct((B, C, L), x.dtype),
            jax.ShapeDtypeStruct((B, C, L), x.dtype),
        ),
        grid=grid,
        in_specs=[w_spec, io_spec],
        out_specs=(io_spec, io_spec),
        compiler_params=pltpu.CompilerParams(
            dimension_semantics=("parallel", "parallel")),
        cost_estimate=cost,
    )(wt, xt)

    sea = jnp.transpose(sea_t, (0, 2, 1))
    mean = jnp.transpose(mean_t, (0, 2, 1))
    return sea, mean


def _reference(x, kernel_sizes):
    """Pure-JAX reference mirroring the PyTorch forward exactly."""
    movings, residuals = [], []
    L = x.shape[1]
    for k in kernel_sizes:
        p = (k - 1) // 2
        xp = jnp.concatenate(
            [jnp.repeat(x[:, 0:1, :], p, axis=1), x, jnp.repeat(x[:, -1:, :], p, axis=1)],
            axis=1,
        )
        moving = jnp.mean(
            jnp.stack([xp[:, d:d + L, :] for d in range(k)], axis=0), axis=0)
        movings.append(moving)
        residuals.append(x - moving)
    return sum(residuals) / len(residuals), sum(movings) / len(movings)


if __name__ == "__main__":
    B, L, C = 2, 16, 8
    kernel_sizes = (3, 7)  # odd kernels, as used with this decomposition block

    key = jax.random.PRNGKey(0)
    x = jax.random.normal(key, (B, L, C), dtype=jnp.float32)

    sea, mean = series_decomp_multi(x, kernel_sizes)
    jax.block_until_ready((sea, mean))

    sea_ref, mean_ref = _reference(x, kernel_sizes)
    assert jnp.allclose(sea, sea_ref, atol=1e-5, rtol=1e-5)
    assert jnp.allclose(mean, mean_ref, atol=1e-5, rtol=1e-5)

    print("KERNEL_OK")
</pallas_src>

<mosaic_0001>
module attributes {stable_mosaic.version = 11 : i64} {
  func.func @_decomp_kernel(%arg0: i32, %arg1: i32, %arg2: memref<16x16xf32, #tpu.memory_space<vmem>>, %arg3: memref<1x8x16xf32, #tpu.memory_space<vmem>>, %arg4: memref<1x8x16xf32, #tpu.memory_space<vmem>>, %arg5: memref<1x8x16xf32, #tpu.memory_space<vmem>>) attributes {dimension_semantics = [#tpu.dimension_semantics<parallel>, #tpu.dimension_semantics<parallel>], iteration_bounds = array<i64: 2, 1>, scalar_prefetch = 0 : i64, scratch_operands = 0 : i64, tpu.core_type = #tpu.core_type<tc>, window_params = [{pipeline_mode = #tpu.pipeline_mode<synchronous>, transform_indices = @transform_0, window_bounds = array<i64: 16, 16>}, {transform_indices = @transform_1, window_bounds = array<i64: 1, 8, 16>}, {transform_indices = @transform_2, window_bounds = array<i64: 1, 8, 16>}, {transform_indices = @transform_3, window_bounds = array<i64: 1, 8, 16>}]} {
    %c0 = arith.constant 0 : index
    %c0_0 = arith.constant 0 : index
    %c0_1 = arith.constant 0 : index
    %0 = vector.load %arg3[%c0, %c0_0, %c0_1] : memref<1x8x16xf32, #tpu.memory_space<vmem>>, vector<1x8x16xf32>
    %1 = vector.shape_cast %0 : vector<1x8x16xf32> to vector<8x16xf32>
    %c0_2 = arith.constant 0 : index
    %c0_3 = arith.constant 0 : index
    %2 = vector.load %arg2[%c0_2, %c0_3] : memref<16x16xf32, #tpu.memory_space<vmem>>, vector<16x16xf32>
    %cst = arith.constant dense<0.000000e+00> : vector<8x16xf32>
    %3 = tpu.matmul %1, %2, %cst {dimension_numbers = #tpu.dot_dimension_numbers<[1], [0], [0], [1], [0, 0, 1, 1], [], []>, precision = #tpu.contract_precision<fp32>} : vector<8x16xf32>, vector<16x16xf32>, vector<8x16xf32> -> vector<8x16xf32>
    %c0_4 = arith.constant 0 : index
    %c0_5 = arith.constant 0 : index
    %c0_6 = arith.constant 0 : index
    %4 = vector.load %arg5[%c0_4, %c0_5, %c0_6] : memref<1x8x16xf32, #tpu.memory_space<vmem>>, vector<1x8x16xf32>
    %5 = vector.shape_cast %4 : vector<1x8x16xf32> to vector<8x16xf32>
    %6 = vector.shape_cast %3 : vector<8x16xf32> to vector<1x8x16xf32>
    tpu.vector_store %arg5[%c0_4, %c0_5, %c0_6], %6 {strides = array<i32>} : memref<1x8x16xf32, #tpu.memory_space<vmem>>, vector<1x8x16xf32>,
    %7 = arith.subf %1, %3 : vector<8x16xf32>
    %c0_7 = arith.constant 0 : index
    %c0_8 = arith.constant 0 : index
    %c0_9 = arith.constant 0 : index
    %8 = vector.load %arg4[%c0_7, %c0_8, %c0_9] : memref<1x8x16xf32, #tpu.memory_space<vmem>>, vector<1x8x16xf32>
    %9 = vector.shape_cast %8 : vector<1x8x16xf32> to vector<8x16xf32>
    %10 = vector.shape_cast %7 : vector<8x16xf32> to vector<1x8x16xf32>
    tpu.vector_store %arg4[%c0_7, %c0_8, %c0_9], %10 {strides = array<i32>} : memref<1x8x16xf32, #tpu.memory_space<vmem>>, vector<1x8x16xf32>,
    return
  }
  func.func @transform_0(%arg0: i32, %arg1: i32) -> (i32, i32) {
    %c0_i32 = arith.constant 0 : i32
    %c0_i32_0 = arith.constant 0 : i32
    %c0_i32_1 = arith.constant 0 : i32
    return %c0_i32, %c0_i32_0 : i32, i32
  }
  func.func @transform_1(%arg0: i32, %arg1: i32) -> (i32, i32, i32) {
    %c0_i32 = arith.constant 0 : i32
    %c0_i32_0 = arith.constant 0 : i32
    return %arg0, %arg1, %c0_i32 : i32, i32, i32
  }
  func.func @transform_2(%arg0: i32, %arg1: i32) -> (i32, i32, i32) {
    %c0_i32 = arith.constant 0 : i32
    %c0_i32_0 = arith.constant 0 : i32
    return %arg0, %arg1, %c0_i32 : i32, i32, i32
  }
  func.func @transform_3(%arg0: i32, %arg1: i32) -> (i32, i32, i32) {
    %c0_i32 = arith.constant 0 : i32
    %c0_i32_0 = arith.constant 0 : i32
    return %arg0, %arg1, %c0_i32 : i32, i32, i32
  }
}

</mosaic_0001>

<bundles_post_ra>
// kernel: tpu_custom_call.1
= control target key start
LH: loop header
LB: loop body
LE: loop exit
PB: predicated region body
PF: predicated region fallthrough
CT: control target
= control target key end

     0   :  { %9 = vsyncpa [#allocation3], 0  ;;  %s1519_s0 = inlined_call_operand.hbm [shape: f32[16,16], index: 0, kind: input, shape index: {}]   ;;  %s1520_s1 = inlined_call_operand.hbm [shape: f32[2,8,16], index: 1, kind: input, shape index: {}]   ;;  %s1521_s2 = inlined_call_operand.hbm [shape: f32[2,8,16], index: 2, kind: output, shape index: {0}]   ;;  %s1522_s3 = inlined_call_operand.hbm [shape: f32[2,8,16], index: 3, kind: output, shape index: {1}]  }
   0x1   :  { %10 = vsyncpa [#allocation6], 0 }
   0x2   :  { %12 = vsyncpa [#allocation6 + $0x1], 0 }
   0x3   :  { %13 = vsyncpa [#allocation4], 0 }
   0x4   :  { %15 = vsyncpa [#allocation4 + $0x1], 0 }
   0x5   :  { %16 = vsyncpa [#allocation9], 0 }
   0x6   :  { %18 = vsyncpa [#allocation9 + $0x1], 0  ;;  %s1254_s12 = smov 0   ;;  %s1256_s13 = smov 0  }
   0x7   :  { %s1258_s14 = smov 0   ;;  %s1260_s15 = smov 0  }
   0x8   :  { %s1262_s16 = smov 0   ;;  %s1264_s17 = smov 0  }
   0x9 LB: > { %s859_s18 = sadd.s32 4294967295, %s1223_s17   ;;  %s860_s19 = sadd.s32 4294967294, %s1223_s17   ;;  %s1223_s17 = sphi %s1264_s17, %s24_s17   ;;  %s1219_s16 = sphi %s1262_s16, %s1546_s16   ;;  %s1215_s15 = sphi %s1260_s15, %s1545_s15   ;;  %s1211_s14 = sphi %s1258_s14, %s1544_s14   ;;  %s1207_s13 = sphi %s1256_s13, %s1543_s13   ;;  %s1203_s12 = sphi %s1254_s12, %s1542_s12  }
   0xa   : > { %p79_p0 = scmp.ne.s32.totalorder %s1207_s13, %s1203_s12  ;;  %p1288_p1 = scmp.eq.s32.totalorder %s859_s18, 0 }
   0xb   : > { %p1292_p2 = scmp.eq.s32.totalorder %s859_s18, 1  ;;  %p111_p3 = scmp.eq.s32.totalorder %s860_s19, 1 }
   0xc   : > { %s1527_s20 = scalar_select %p1288_p1, 1, 0 }
   0xd   : > { %s1528_s21 = scalar_select %p1292_p2, 1, 0 }
   0xe   : > { %p1298_p4 = por %p1288_p1, %p79_p0  ;;  %p861_p5 = scmp.ge.s32.totalorder %s1223_s17, 1 }
   0xf   : > { %p1303_p6 = por %p111_p3, %p79_p0  ;;  %p146_p7 = scmp.lt.s32.totalorder %s1223_s17, 3 }
  0x10   : > { %s1529_s22 = scalar_select %p1298_p4, 1, 0 }
  0x11   : > { %s1530_s23 = scalar_select %p1303_p6, 1, 0 }
  0x12   : > { %p1308_p8 = pnand %p861_p5, %p146_p7  ;;  %s1225_s25 = smov [#allocation2]  }
  0x13   : > { %s158_s26 = sshll.u32 %s1225_s25, 4  ;;  %s36_s28 = sadd.s32 1, %s1219_s16  ;;  %s159_s26 = int_to_ptr.vmem [resolvable:$true] %s158_s26 }
  0x14   : > { %s1531_s24 = scalar_select %p1308_p8, 1, 0 }
  0x15   : > { %p974_p9 = pneg %p1308_p8  ;;  %s1047_s4 = scalar_lea.hbm %s1519_s0, 256 }
  0x16   : > { %p1048_p12 = scmp.ne.s32.totalorder %s1519_s0, %s1047_s4  ;;  %p1054_p5 = scmp.lt.u32.totalorder %s1047_s4, %s1519_s0 }
  0x17   : > { %p1317_p11 = pnand %p974_p9, %p1288_p1 }
  0x19   : > { %p1049_p13 = pneg %p1317_p11 }
  0x1b   : > { %p1050_p0 = pnand %p1049_p13, %p1048_p12 }
  0x1d   : > { %p1051_p3 = pneg %p1050_p0 }
  0x1f   : > { %p1056_p7 = pnand %p1054_p5, %p1051_p3 }
  0x21   : > { %1059 = shalt.err (!%p1056_p7)
}
  0x22   : > { %s1060_s9 = scalar_lea.vmem %s159_s26, 256  ;;  %p1068_p4 = scmp.lt.s32.totalorder %s159_s26, %s159_s26 }
  0x23   : > { %p1061_p9 = scmp.ne.s32.totalorder %s159_s26, %s1060_s9  ;;  %p1069_p1 = scmp.lt.s32.totalorder %s1060_s9, %s1060_s9 }
  0x25   : > { %p1063_p10 = pnand %p1061_p9, %p1049_p13  ;;  %p1070_p8 = por %p1069_p1, %p1068_p4 }
  0x27   : > { %p1064_p6 = pneg %p1063_p10 }
  0x29   : > { %p1071_p2 = pnand %p1070_p8, %p1064_p6 }
  0x2b   : > { %1074 = shalt.err (!%p1071_p2)
}
  0x2c   : > { %s1226_s10 = smov 128   ;;  %s1227_s11 = smov 8  }
  0x2d   : > { %977 = dma.hbm_to_vmem [thread:$0]  (!%p1317_p11), %s1519_s0, 256, %s159_s26, [#allocation3], %s1226_s10, %s1226_s10, %s1227_s11  }
  0x2e   : > { %p38_p1 = scmp.ge.s32.totalorder %s36_s28, 2  ;;  %s66_s25 = sadd.s32 1, %s1211_s14 }
  0x2f   : > { %p73_p2 = scmp.ne.s32.totalorder %s1211_s14, %s1207_s13  ;;  %p74_p4 = scmp.eq.s32.totalorder %s1223_s17, 0 }
  0x30   : > { %s1548_s28 = smov (%p38_p1, %s36_s28), 0  ;;  %p1534_p8 = scmp.ne.s32.totalorder %s1528_s21, 0 }
  0x31   : > { %p1344_p6 = por %p74_p4, %p73_p2  ;;  %s61_s27 = ssub.s32 %s1219_s16, %s1548_s28 }
  0x32   : > { %p1350_p10 = por %p1534_p8, %p73_p2  ;;  %p990_p12 = scmp.lt.s32.totalorder %s1223_s17, 2 }
  0x33   : > { %p64_p11 = scmp.eq.s32.totalorder %s61_s27, 0  ;;  %s172_s26 = sand.u32 1, %s1211_s14  }
  0x34   : > { %s864_s4 = sshll.u32 %s172_s26, 3  ;;  %s865_s6 = sshll.u32 %s1219_s16, 7 }
  0x35   : > { %s1359_s5 = scalar_select %p64_p11, %s1211_s14, %s66_s25  }
  0x36   : > { %s1365_s9 = scalar_lea.hbm %s1520_s1, %s865_s6  ;;  %s176_s21 = scalar_lea.vmem [#allocation5], %s864_s4 }
  0x37   : > { %s184_s10 = sshll.u32 %s176_s21, 4  ;;  %p1371_p13 = pnand %p990_p12, %p1344_p6  ;;  %s1367_s10 = int_to_ptr.vmem [resolvable:$true] %s184_s10 }
  0x38   : > { %s173_s18 = scalar_lea.sflag [#allocation6], %s172_s26  ;;  %s1075_s19 = scalar_lea.hbm %s1365_s9, 128 }
  0x39   : > { %p1076_p0 = scmp.ne.s32.totalorder %s1365_s9, %s1075_s19  ;;  %p1077_p3 = pneg %p1371_p13 }
  0x3a   : > { %s1080_s4 = scalar_lea.hbm %s1520_s1, 256  ;;  %p1081_p9 = scmp.lt.u32.totalorder %s1365_s9, %s1520_s1 }
  0x3b   : > { %p1078_p5 = pnand %p1077_p3, %p1076_p0  ;;  %p1082_p1 = scmp.lt.u32.totalorder %s1080_s4, %s1075_s19 }
  0x3c   : > { %p1084_p4 = scmp.lt.u32.totalorder %s1075_s19, %s1365_s9 }
  0x3d   : > { %p1079_p7 = pneg %p1078_p5  ;;  %p1083_p2 = por %p1082_p1, %p1081_p9 }
  0x3f   : > { %p1085_p6 = por %p1084_p4, %p1083_p2 }
  0x41   : > { %p1086_p8 = pnand %p1085_p6, %p1079_p7 }
  0x43   : > { %1089 = shalt.err (!%p1086_p8)
}
  0x44   : > { %s1090_s26 = scalar_lea.vmem %s1367_s10, 128  ;;  %s1228_s7 = smov [#allocation5]  }
  0x45   : > { %p1091_p12 = scmp.ne.s32.totalorder %s1367_s10, %s1090_s26  ;;  %s1095_s8 = sshll.u32 %s1228_s7, 4  ;;  %s1096_s8 = int_to_ptr.vmem [resolvable:$false] %s1095_s8 }
  0x46   : > { %s1097_s21 = scalar_lea.vmem %s1096_s8, 256  ;;  %p1098_p5 = scmp.lt.s32.totalorder %s1367_s10, %s1096_s8 }
  0x47   : > { %p1093_p11 = pnand %p1091_p12, %p1077_p3  ;;  %p1099_p9 = scmp.lt.s32.totalorder %s1097_s21, %s1090_s26 }
  0x49   : > { %p1094_p0 = pneg %p1093_p11  ;;  %p1100_p1 = por %p1099_p9, %p1098_p5 }
  0x4b   : > { %p1101_p2 = pnand %p1100_p1, %p1094_p0 }
  0x4d   : > { %1104 = shalt.err (!%p1101_p2)
}
  0x4e   : > { %981 = dma.hbm_to_vmem [thread:$0]  (!%p1371_p13), %s1365_s9, 128, %s1367_s10, %s173_s18  }
  0x4f   : > { %p1537_p7 = scmp.ne.s32.totalorder %s1531_s24, 0 }
  0x50   : > { %p1538_p3 = scmp.ne.s32.totalorder (!%p1537_p7), %s1527_s20, 0 }
  0x51   : > { %193 = sbr.rel (%p1537_p7) target bundleno = 373 (0x175), region = 28 }
  0x58   : > { %1186 = dma.done.wait (%p1538_p3), [#allocation3], 256  }
  0x59   : > { %1188 = vsyncadd (%p1538_p3), [#allocation3], 4294967040  ;;  %s1407_s19 = sand.u32 1, %s1207_s13   ;;  %p1539_p13 = scmp.ne.s32.totalorder %s1529_s22, 0 }
  0x5a   : > { %s1410_s25 = sshll.u32 %s1407_s19, 3  ;;  %s200_s11 = scalar_lea.sflag [#allocation6], %s1407_s19 }
  0x5b   : > { %s203_s9 = scalar_lea.vmem [#allocation5], %s1410_s25 }
  0x5c   : > { %1190 = dma.done.wait (%p1539_p13), %s200_s11, 128  }
  0x5d   : > { %1192 = vsyncadd (%p1539_p13), %s200_s11, 4294967168  ;;  %v1229_v0 = vmov 0.0|0.0   ;;  %vm1230_vm0 = vmmov 0   ;;  %v1231_v1 = vmov 0.0   ;;  %vm234_vm1 = vcmask 130048   ;;  %v232_v2 = vld [vmem:[#allocation2] sm:$0xff] }
  0x5e   : > { %946 = vmatprep.subr.bf16.mxu0 %v1229_v0  ;;  %920 = vmatprep.mubr.msk.f32.mxu0 %vm1230_vm0, %v1231_v1  ;;  %v233_v3 = vld [vmem:[#allocation2 + $0x8] sm:$0xff]  ;;  %v1420_v4 = vld [vmem:[%s203_s9] sm:$0xff]  ;;  %v239_v5 = vand.u32 4294901760, %v232_v2  ;;  %s873_s20 = sshll.u32 %s1215_s15, 7  ;;  %s230_s22 = scalar_lea.vmem [#allocation8], %s1410_s25 }
  0x5f   : > { %937 = vmatprep.subr.bf16.mxu1 %v1229_v0  ;;  %899 = vmatprep.mubr.msk.f32.mxu1 %vm1230_vm0, %v1231_v1  ;;  %v242_v6 = vand.u32 4294901760, %v233_v3  ;;  %v236_v7 = vsel %vm234_vm1, %v1420_v4, 0  ;;  %s734_s24 = sshll.u32 %s230_s22, 4  ;;  %s223_s10 = scalar_lea.vmem [#allocation7], %s1410_s25  ;;  %s1438_s24 = int_to_ptr.vmem [resolvable:$true] %s734_s24 }
  0x60   : > { %v305_v8 = vand.u32 4294901760, %v236_v7  ;;  %v317_v10 = vsub.f32 %v232_v2, %v239_v5  ;;  %s720_s18 = sshll.u32 %s223_s10, 4  ;;  %s1436_s29 = scalar_lea.hbm %s1522_s3, %s873_s20  ;;  %s1446_s18 = int_to_ptr.vmem [resolvable:$true] %s720_s18 }
  0x61   : > { %v938_v9 = vpack.c.bf16 %v242_v6, %v239_v5  ;;  %v324_v11 = vsub.f32 %v233_v3, %v242_v6  ;;  %s1444_s26 = scalar_lea.hbm %s1521_s2, %s873_s20  ;;  %s706_s7 = scalar_lea.sflag [#allocation9], %s1407_s19 }
  0x62   : > { %v306_v12 = vsub.f32 %v236_v7, %v305_v8  ;;  %v318_v13 = vand.u32 4294901760, %v317_v10  ;;  %s1105_s8 = scalar_lea.vmem %s1438_s24, 128  ;;  %s1232_s21 = smov [#allocation8]  }
  0x63   : > { %948 = vmatpush3.bf16.msra.mxu0 %v938_v9  ;;  %939 = vmatpush3.bf16.msra.mxu1 %v938_v9  ;;  %v325_v14 = vand.u32 4294901760, %v324_v11  ;;  %v944_v24 = vpack.c.bf16 %v324_v11, %v317_v10  ;;  %p1106_p4 = scmp.ne.s32.totalorder %s1438_s24, %s1105_s8  ;;  %s1109_s11 = sshll.u32 %s1232_s21, 4  ;;  %s1110_s11 = int_to_ptr.vmem [resolvable:$false] %s1109_s11 }
  0x64   : > { %v307_v15 = vand.u32 4294901760, %v306_v12  ;;  %940 = vmatprep.subr.bf16.mxu1 %v1229_v0  ;;  %949 = vmatprep.subr.bf16.mxu0 %v1229_v0  ;;  %v319_v16 = vsub.f32 %v317_v10, %v318_v13  ;;  %s1111_s9 = scalar_lea.vmem %s1110_s11, 256  ;;  %p1112_p12 = scmp.lt.s32.totalorder %s1438_s24, %s1110_s11 }
  0x65   : > { %v326_v17 = vsub.f32 %v324_v11, %v325_v14  ;;  %v950_v18 = vpack.c.bf16 %v325_v14, %v318_v13  ;;  %p1107_p6 = pnand %p1106_p4, %p1350_p10  ;;  %p1113_p11 = scmp.lt.s32.totalorder %s1111_s9, %s1105_s8 }
  0x66   : > { %921 = vmatmul.mubr.f32.vlgmr.msra.gmra.mrb[0].mxu0 %v307_v15  ;;  %v308_v19 = vsub.f32 %v306_v12, %v307_v15  ;;  %v320_v20 = vand.u32 4294901760, %v319_v16 }
  0x67   : > { %v327_v21 = vand.u32 4294901760, %v326_v17  ;;  %951 = vmatpush3.bf16.msra.mxu0 %v950_v18  ;;  %927 = vmatprep.mubr.msk.f32.mxu0 %vm1230_vm0, %v1231_v1  ;;  %p1108_p8 = pneg %p1107_p6  ;;  %p1114_p0 = por %p1113_p11, %p1112_p12 }
  0x68   : > { %v309_v22 = vand.u32 4294901760, %v308_v19  ;;  %952 = vmatprep.subr.bf16.mxu0 %v1229_v0 }
  0x69   : > { %v941_v23 = vpack.c.bf16 %v327_v21, %v320_v20  ;;  %p1115_p5 = pnand %p1114_p0, %p1108_p8 }
  0x6a   : > { %900 = vmatmul.mubr.f32.vlgmr.msra.gmra.mrb[0].mxu1 %v309_v22 }
  0x6b   : > { %942 = vmatpush3.bf16.msra.mxu1 %v941_v23  ;;  %906 = vmatprep.mubr.msk.f32.mxu1 %vm1230_vm0, %v1231_v1 }
  0x6c   : > { %943 = vmatprep.subr.bf16.mxu1 %v1229_v0 }
  0x6e   : > { %928 = vmatmul.mubr.f32.vlgmr.msra.gmra.mrb[0].mxu0 %v305_v8 }
  0x6f   : > { %954 = vmatpush3.bf16.msra.mxu0 %v938_v9  ;;  %934 = vmatprep.mubr.msk.f32.mxu0 %vm1230_vm0, %v1231_v1 }
  0x72   : > { %907 = vmatmul.mubr.f32.vlgmr.msra.gmra.mrb[0].mxu1 %v305_v8 }
  0x73   : > { %945 = vmatpush3.bf16.msra.mxu1 %v944_v24  ;;  %913 = vmatprep.mubr.msk.f32.mxu1 %vm1230_vm0, %v1231_v1 }
  0x76   : > { %935 = vmatmul.mubr.f32.vlgmr.msra.gmra.mrb[0].mxu0 %v305_v8 }
  0x7a   : > { %914 = vmatmul.mubr.f32.vlgmr.msra.gmra.mrb[0].mxu1 %v306_v12 }
 0x149   : > { %v693_v25 = vpop.f32.mrb[0].mxu0 }
 0x14a   : > { %v936_v26 = vpop.f32.mrb[1].mxu0 }
 0x14d   : > { %v468_v27 = vpop.f32.mrb[0].mxu1 }
 0x14e   : > { %v955_v28 = vadd.f32 %v693_v25, %v468_v27  ;;  %v915_v29 = vpop.f32.mrb[1].mxu1 }
 0x150   : > { %v698_v30 = vsub.f32 %v1420_v4, %v955_v28  ;;  %697 = vst.msk [vmem:[%s230_s22] sm:$0xff] %vm234_vm1, %v955_v28 }
 0x151   : > { %1118 = shalt.err (!%p1115_p5)
}
 0x152   : > { %s1119_s20 = scalar_lea.hbm %s1436_s29, 128  ;;  %s1123_s4 = scalar_lea.hbm %s1522_s3, 256 }
 0x153   : > { %p1120_p9 = scmp.ne.s32.totalorder %s1436_s29, %s1119_s20  ;;  %p1124_p7 = scmp.lt.u32.totalorder %s1436_s29, %s1522_s3 }
 0x154   : > { %p1125_p3 = scmp.lt.u32.totalorder %s1123_s4, %s1119_s20  ;;  %p1127_p4 = scmp.lt.u32.totalorder %s1119_s20, %s1436_s29 }
 0x155   : > { %p1121_p1 = pnand %p1120_p9, %p1350_p10 }
 0x156   : > { %p1126_p13 = por %p1125_p3, %p1124_p7 }
 0x157   : > { %p1122_p2 = pneg %p1121_p1 }
 0x158   : > { %p1128_p6 = por %p1127_p4, %p1126_p13 }
 0x15a   : > { %p1129_p8 = pnand %p1128_p6, %p1122_p2 }
 0x15c   : > { %1132 = shalt.err (!%p1129_p8)
}
 0x15d   : > { %971 = dma.vmem_to_hbm [thread:$0]  (%p1350_p10), %s1438_s24, 128, %s1436_s29, %s706_s7   ;;  %699 = vst.msk [vmem:[%s223_s10] sm:$0xff] %vm234_vm1, %v698_v30 }
 0x15e   : > { %s701_s8 = scalar_lea.sflag [#allocation4], %s1407_s19  ;;  %s1133_s21 = scalar_lea.vmem %s1446_s18, 128 }
 0x15f   : > { %p1134_p12 = scmp.ne.s32.totalorder %s1446_s18, %s1133_s21  ;;  %s1233_s11 = smov [#allocation7]  }
 0x160   : > { %s1137_s9 = sshll.u32 %s1233_s11, 4  ;;  %s1138_s9 = int_to_ptr.vmem [resolvable:$false] %s1137_s9 }
 0x161   : > { %p1135_p11 = pnand %p1134_p12, %p1350_p10  ;;  %s1139_s20 = scalar_lea.vmem %s1138_s9, 256 }
 0x162   : > { %p1140_p5 = scmp.lt.s32.totalorder %s1446_s18, %s1138_s9  ;;  %p1141_p9 = scmp.lt.s32.totalorder %s1139_s20, %s1133_s21 }
 0x163   : > { %p1136_p0 = pneg %p1135_p11 }
 0x164   : > { %p1142_p1 = por %p1141_p9, %p1140_p5 }
 0x166   : > { %p1143_p2 = pnand %p1142_p1, %p1136_p0 }
 0x168   : > { %1146 = shalt.err (!%p1143_p2)
}
 0x169   : > { %s1147_s19 = scalar_lea.hbm %s1444_s26, 128  ;;  %s1151_s10 = scalar_lea.hbm %s1521_s2, 256 }
 0x16a   : > { %p1148_p7 = scmp.ne.s32.totalorder %s1444_s26, %s1147_s19  ;;  %p1152_p4 = scmp.lt.u32.totalorder %s1444_s26, %s1521_s2 }
 0x16b   : > { %p1153_p6 = scmp.lt.u32.totalorder %s1151_s10, %s1147_s19  ;;  %p1155_p12 = scmp.lt.u32.totalorder %s1147_s19, %s1444_s26 }
 0x16c   : > { %p1149_p3 = pnand %p1148_p7, %p1350_p10 }
 0x16d   : > { %p1154_p8 = por %p1153_p6, %p1152_p4 }
 0x16e   : > { %p1150_p13 = pneg %p1149_p3 }
 0x16f   : > { %p1156_p11 = por %p1155_p12, %p1154_p8 }
 0x171   : > { %p1157_p0 = pnand %p1156_p11, %p1150_p13 }
 0x173   : > { %1160 = shalt.err (!%p1157_p0)
}
 0x174   : > { %970 = dma.vmem_to_hbm [thread:$0]  (%p1350_p10), %s1446_s18, 128, %s1444_s26, %s701_s8  }
 0x175 PF: > { %s746_s22 = sand.u32 1, %s1203_s12   ;;  %p1540_p5 = scmp.ne.s32.totalorder %s1530_s23, 0 }
 0x176   : > { %p1541_p9 = scmp.ge.s32.totalorder %s1223_s17, 2  ;;  %s747_s27 = scalar_lea.sflag [#allocation4], %s746_s22 }
 0x178   : > { %p983_p1 = pnand %p1541_p9, %p1540_p5 }
 0x17a   : > { %1194 = dma.done.wait (!%p983_p1), %s747_s27, 128  }
 0x17b   : > { %1196 = vsyncadd (!%p983_p1), %s747_s27, 4294967168  ;;  %s756_s4 = scalar_lea.sflag [#allocation9], %s746_s22 }
 0x17c   : > { %1198 = dma.done.wait (!%p983_p1), %s756_s4, 128  }
 0x17d   : > { %1200 = vsyncadd (!%p983_p1), %s756_s4, 4294967168  ;;  %s24_s17 = sadd.s32 1, %s1223_s17   ;;  %s1542_s12 = smov %s1207_s13 }
 0x17e   : > { %p21_p2 = scmp.ge.s32.totalorder %s24_s17, 4   ;;  %s1543_s13 = smov %s1211_s14 }
 0x17f   : > { %s1544_s14 = smov %s1359_s5  ;;  %s1545_s15 = smov %s1219_s16 }
 0x180   : > { %s1546_s16 = smov %s1548_s28  ;;  %23 = sbr.rel (!%p21_p2) target bundleno = 9 (0x9), region = 95 }
 0x187   :  { %761 = vsyncpa [#allocation3], 1 }
 0x188   :  { %763 = vsyncpa [#allocation3 + $0x1], 1 }
 0x189   :  { %764 = vsyncpa [#allocation6], 1 }
 0x18a   :  { %766 = vsyncpa [#allocation6 + $0x1], 1 }
 0x18b   :  { %767 = vsyncpa [#allocation4], 1 }
 0x18c   :  { %769 = vsyncpa [#allocation4 + $0x1], 1 }
 0x18d   :  { %770 = vsyncpa [#allocation9], 1 }
 0x18e   :  { %772 = vsyncpa [#allocation9 + $0x1], 1 }

</bundles_post_ra>
